<compile_context>
chip_gen: v6e
topology: v6e:2x2x1
jax: 0.10.0
libtpu: 0.0.40
codegen_flags: <defaults>
</compile_context>

<pallas_src>
import functools
import math

import jax
import jax.numpy as jnp
from jax.experimental import pallas as pl
from jax.experimental.pallas import tpu as pltpu


# ----------------------------------------------------------------------------
# Tunables
# ----------------------------------------------------------------------------
_SMALL_OUTPUT_BYTES = 256 * 1024     # below this, XLA concat (fusable) wins
_LANE_TILE_BYTES = 512 * 1024        # cap on lane-dim slab when tiling Q


@functools.lru_cache(maxsize=1)
def _tunables():
    """(target_block_bytes, max_block_bytes, vmem_limit_bytes), per chip gen."""
    vmem_bytes = None
    try:
        vmem_bytes = int(pltpu.get_tpu_info().vmem_capacity_bytes)
    except Exception:  # pragma: no cover - info query unavailable
        vmem_bytes = None

    kind = ""
    try:
        kind = jax.devices()[0].device_kind.lower()
    except Exception:  # pragma: no cover
        kind = ""

    if vmem_bytes is None:
        if ("v5" in kind) or ("v6" in kind):
            vmem_bytes = 128 * 1024 * 1024
        else:
            vmem_bytes = 64 * 1024 * 1024   # conservative (v7x-sized)

    if vmem_bytes >= 100 * 1024 * 1024:
        # v5e / v6e: 128 MiB VMEM. Worst case usage ~= 4x max block (double
        # buffering of output + sum of inputs) = 64 MiB < 96 MiB limit.
        max_blk = 16 * 1024 * 1024
        limit = 96 * 1024 * 1024
        # v5e (~0.8 TB/s HBM): a 4 MiB block already makes the ~0.35us step
        # overhead <10%; bigger blocks buy little.
        target = 4 * 1024 * 1024 if "v5" in kind else 8 * 1024 * 1024
    else:
        # v7x: 64 MiB physical VMEM; keep output block <= ~4 MiB.
        max_blk = 6 * 1024 * 1024
        limit = 32 * 1024 * 1024
        target = 4 * 1024 * 1024
    return target, max_blk, limit


def _sublane_min(itemsize: int) -> int:
    # 8 sublanes per f32 vreg; sub-32-bit dtypes pack along sublanes.
    return max(8, 32 // max(1, itemsize))


def _ceil_to(x: int, m: int) -> int:
    return ((x + m - 1) // m) * m


def _ceil_div(a: int, b: int) -> int:
    return -(-a // b)


# ----------------------------------------------------------------------------
# Kernels (variadic: N input refs + 1 output ref; offsets/sizes are static).
# ----------------------------------------------------------------------------
def _lane_concat_kernel(*refs, offsets, sizes):
    """Last-axis concat: inputs land in 128-lane-aligned output slices."""
    o_ref = refs[-1]
    for r, off, h in zip(refs[:-1], offsets, sizes):
        o_ref[:, off:off + h] = r[...]


def _row_concat_kernel(*refs, offsets, sizes):
    """Non-last-axis concat: trailing dim stays on lanes (full-width stores),
    inputs land in static sublane-row slices of the output block."""
    o_ref = refs[-1]
    for r, off, c in zip(refs[:-1], offsets, sizes):
        o_ref[:, off:off + c, :] = r[...]


# ----------------------------------------------------------------------------
# pallas_call builders
# ----------------------------------------------------------------------------
def _pallas_concat_lane(flats, dtype):
    """flats: list of (R, H_i); every H_i (hence every offset) is a multiple
    of 128, so every store is unmasked and lane-dense."""
    target, max_blk, vmem_limit = _tunables()

    R = int(flats[0].shape[0])
    sizes = [int(f.shape[1]) for f in flats]
    offsets = [0]
    for h in sizes[:-1]:
        offsets.append(offsets[-1] + h)
    Htot = sum(sizes)
    itemsize = jnp.dtype(dtype).itemsize
    min_rows = _sublane_min(itemsize)
    row_bytes = Htot * itemsize

    if min_rows * row_bytes > max_blk:
        # TODO(synk): HBM->HBM DMA concat for ultra-wide rows instead of XLA.
        return None

    if R >= min_rows:
        tr = (target // row_bytes) // min_rows * min_rows
        tr = min(tr, _ceil_to(R, min_rows))
        tr = max(tr, min_rows)
        # v7x has 2 TensorCores: give the parallel axis >= 2 blocks if we can.
        if _ceil_div(R, tr) < 2 and R > min_rows:
            tr = max(min_rows, _ceil_to(_ceil_div(R, 2), min_rows))
    else:
        tr = R  # full (non-multiple) extent is a legal block shape
    grid = (pl.cdiv(R, tr),)

    kernel = functools.partial(
        _lane_concat_kernel, offsets=tuple(offsets), sizes=tuple(sizes))
    return pl.pallas_call(
        kernel,
        out_shape=jax.ShapeDtypeStruct((R, Htot), dtype),
        grid=grid,
        in_specs=[pl.BlockSpec((tr, h), lambda i: (i, 0)) for h in sizes],
        out_specs=pl.BlockSpec((tr, Htot), lambda i: (i, 0)),
        compiler_params=pltpu.CompilerParams(
            dimension_semantics=("parallel",),
            vmem_limit_bytes=vmem_limit),
        cost_estimate=pl.CostEstimate(
            flops=0, transcendentals=0,
            bytes_accessed=2 * R * Htot * itemsize),
    )(*flats)


def _pallas_concat_row(views, dtype):
    """views: list of (P, C_i, Q) (same P, Q); concat along the middle dim.
    Q (original trailing dims) stays on lanes -> full-lane-width stores."""
    target, max_blk, vmem_limit = _tunables()

    P = int(views[0].shape[0])
    Q = int(views[0].shape[2])
    sizes = [int(v.shape[1]) for v in views]
    offsets = [0]
    for c in sizes[:-1]:
        offsets.append(offsets[-1] + c)
    Ctot = sum(sizes)
    itemsize = jnp.dtype(dtype).itemsize

    if Q * itemsize <= _LANE_TILE_BYTES:
        tq = Q
    else:
        tq = max(128, (_LANE_TILE_BYTES // itemsize) // 128 * 128)

    slab_bytes = Ctot * tq * itemsize  # output block with tp == 1
    if slab_bytes > max_blk:
        # Shrink the lane tile (128-multiples) instead of falling back to XLA.
        tq_fit = (max_blk // (Ctot * itemsize)) // 128 * 128
        if tq_fit < 128:
            # TODO(synk): HBM->HBM DMA concat for huge-Ctot slabs.
            return None
        tq = min(tq, tq_fit)
        slab_bytes = Ctot * tq * itemsize

    tp = max(1, min(P, target // slab_bytes))
    # v7x dual-TC: make sure the leading parallel axis has >= 2 blocks.
    if _ceil_div(P, tp) < 2 and P > 1:
        tp = _ceil_div(P, 2)
    grid = (pl.cdiv(P, tp), pl.cdiv(Q, tq))

    kernel = functools.partial(
        _row_concat_kernel, offsets=tuple(offsets), sizes=tuple(sizes))
    return pl.pallas_call(
        kernel,
        out_shape=jax.ShapeDtypeStruct((P, Ctot, Q), dtype),
        grid=grid,
        in_specs=[pl.BlockSpec((tp, c, tq), lambda p, q: (p, 0, q))
                  for c in sizes],
        out_specs=pl.BlockSpec((tp, Ctot, tq), lambda p, q: (p, 0, q)),
        compiler_params=pltpu.CompilerParams(
            dimension_semantics=("parallel", "parallel"),
            vmem_limit_bytes=vmem_limit),
        cost_estimate=pl.CostEstimate(
            flops=0, transcendentals=0,
            bytes_accessed=2 * P * Ctot * Q * itemsize),
    )(*views)


# ----------------------------------------------------------------------------
# Dispatcher (torch.cat semantics)
# ----------------------------------------------------------------------------
def pallas_concat(tensors, dim):
    tensors = list(tensors)
    if not tensors:
        raise ValueError("cannot concatenate an empty sequence of tensors")
    if len(tensors) == 1:
        return tensors[0]

    ndim = tensors[0].ndim
    dim = int(dim) % ndim

    # torch.cat applies dtype promotion across its inputs.
    dtype = jnp.result_type(*tensors)
    tensors = [t if t.dtype == dtype else t.astype(dtype) for t in tensors]
    itemsize = jnp.dtype(dtype).itemsize

    out_shape = list(tensors[0].shape)
    out_shape[dim] = sum(int(t.shape[dim]) for t in tensors)
    out_nbytes = math.prod(out_shape) * itemsize

    # Small outputs / degenerate empty slices: XLA's native concat wins
    # (kernel launch + pipeline warmup dominates, and XLA can fuse).
    if out_nbytes < _SMALL_OUTPUT_BYTES or any(
            int(t.shape[dim]) == 0 for t in tensors):
        return jnp.concatenate(tensors, axis=dim)

    P = math.prod(tensors[0].shape[:dim])
    Q = math.prod(tensors[0].shape[dim + 1:])
    sizes = [int(t.shape[dim]) for t in tensors]

    out = None
    if dim == ndim - 1:
        # The concat axis IS the lane axis: only take the Pallas path when
        # every slice is 128-lane aligned (unmasked, lane-dense stores).
        if all(h % 128 == 0 for h in sizes):
            flats = [t.reshape(P, s) for t, s in zip(tensors, sizes)]
            out = _pallas_concat_lane(flats, dtype)
    else:
        # Row-block concat: pure reshape (no transpose), lanes stay dense.
        # Require sublane-aligned running offsets (8/f32, 16/bf16, 32/int8);
        # misaligned offsets would lower to masked vst + XLU shifts.
        pack = _sublane_min(itemsize)
        offsets_aligned = all(s % pack == 0 for s in sizes[:-1])
        if Q >= 128 and offsets_aligned:
            views = [t.reshape(P, s, Q) for t, s in zip(tensors, sizes)]
            out = _pallas_concat_row(views, dtype)

    if out is None:
        # Narrow lanes / misaligned widths or offsets / oversized slabs:
        # a Pallas kernel here would only add masked stores + overhead.
        return jnp.concatenate(tensors, axis=dim)
    return out.reshape(tuple(out_shape))


class LeakyGatedCrossAttentionModule:
    """JAX/Pallas port of the (parameter-free) PyTorch module.

    The reference __init__ body is `pass` -> no weights exist; forward(x_m,
    x_n) is exactly torch.cat(x_m, x_n) where x_m is a sequence of tensors
    and x_n is the concatenation dimension."""

    def __init__(self, om_output_size, rg_output_size, self_output_size):
        self.om_output_size = om_output_size
        self.rg_output_size = rg_output_size
        self.self_output_size = self_output_size

    def __call__(self, x_m, x_n):
        return self.forward(x_m, x_n)

    def forward(self, x_m, x_n):
        return pallas_concat(x_m, x_n)


if __name__ == "__main__":
    key = jax.random.PRNGKey(0)
    k1, k2, k3, k4, k5, k6, k7 = jax.random.split(key, 7)

    module = LeakyGatedCrossAttentionModule(
        om_output_size=256, rg_output_size=128, self_output_size=384)

    # 1) Tiny shapes -> small-size dispatch (launch cost would dominate).
    a = jax.random.normal(k1, (2, 8, 32), dtype=jnp.float32)
    b = jax.random.normal(k2, (2, 8, 32), dtype=jnp.float32)
    out = jax.block_until_ready(module((a, b), 2))
    ref = jnp.concatenate([a, b], axis=2)
    assert out.shape == ref.shape and out.dtype == ref.dtype
    assert bool(jnp.allclose(out, ref)), "tiny-path concat mismatch"

    # 2) Last-axis concat with 128-aligned widths -> Pallas lane-concat kernel
    #    (output ~768 KiB; leading grid axis forced to 2 blocks for dual-TC).
    a = jax.random.normal(k3, (8, 64, 256), dtype=jnp.float32)
    b = jax.random.normal(k4, (8, 64, 128), dtype=jnp.float32)
    out = jax.block_until_ready(module((a, b), -1))
    ref = jnp.concatenate([a, b], axis=-1)
    assert out.shape == ref.shape and out.dtype == ref.dtype
    assert bool(jnp.allclose(out, ref)), "lane-concat kernel mismatch"

    # 3) Middle-axis 3-way concat -> single variadic Pallas row-concat kernel
    #    (output 512 KiB; sublane-aligned offsets 0/64/192; grid (2, 1)).
    a = jax.random.normal(k5, (2, 64, 256), dtype=jnp.float32)
    b = jax.random.normal(k6, (2, 128, 256), dtype=jnp.float32)
    c = jax.random.normal(k7, (2, 64, 256), dtype=jnp.float32)
    out = jax.block_until_ready(module((a, b, c), 1))
    ref = jnp.concatenate([a, b, c], axis=1)
    assert out.shape == ref.shape and out.dtype == ref.dtype
    assert bool(jnp.allclose(out, ref)), "row-concat kernel mismatch"

    print("KERNEL_OK")
</pallas_src>

<mosaic_0001>
module attributes {stable_mosaic.version = 11 : i64} {
  func.func @_lane_concat_kernel(%arg0: i32, %arg1: memref<256x256xf32, #tpu.memory_space<vmem>>, %arg2: memref<256x128xf32, #tpu.memory_space<vmem>>, %arg3: memref<256x384xf32, #tpu.memory_space<vmem>>) attributes {dimension_semantics = [#tpu.dimension_semantics<parallel>], iteration_bounds = array<i64: 2>, scalar_prefetch = 0 : i64, scratch_operands = 0 : i64, tpu.core_type = #tpu.core_type<tc>, window_params = [{transform_indices = @transform_0, window_bounds = array<i64: 256, 256>}, {transform_indices = @transform_1, window_bounds = array<i64: 256, 128>}, {transform_indices = @transform_2, window_bounds = array<i64: 256, 384>}]} {
    %c0 = arith.constant 0 : index
    %c0_0 = arith.constant 0 : index
    %0 = vector.load %arg1[%c0, %c0_0] : memref<256x256xf32, #tpu.memory_space<vmem>>, vector<256x256xf32>
    %c0_1 = arith.constant 0 : index
    %c0_2 = arith.constant 0 : index
    %1 = vector.load %arg3[%c0_1, %c0_2] : memref<256x384xf32, #tpu.memory_space<vmem>>, vector<256x256xf32>
    tpu.vector_store %arg3[%c0_1, %c0_2], %0 {strides = array<i32>} : memref<256x384xf32, #tpu.memory_space<vmem>>, vector<256x256xf32>,
    %c0_3 = arith.constant 0 : index
    %c0_4 = arith.constant 0 : index
    %2 = vector.load %arg2[%c0_3, %c0_4] : memref<256x128xf32, #tpu.memory_space<vmem>>, vector<256x128xf32>
    %c0_5 = arith.constant 0 : index
    %c256 = arith.constant 256 : index
    %3 = vector.load %arg3[%c0_5, %c256] : memref<256x384xf32, #tpu.memory_space<vmem>>, vector<256x128xf32>
    tpu.vector_store %arg3[%c0_5, %c256], %2 {strides = array<i32>} : memref<256x384xf32, #tpu.memory_space<vmem>>, vector<256x128xf32>,
    return
  }
  func.func @transform_0(%arg0: i32) -> (i32, i32) {
    %c0_i32 = arith.constant 0 : i32
    %c0_i32_0 = arith.constant 0 : i32
    return %arg0, %c0_i32 : i32, i32
  }
  func.func @transform_1(%arg0: i32) -> (i32, i32) {
    %c0_i32 = arith.constant 0 : i32
    %c0_i32_0 = arith.constant 0 : i32
    return %arg0, %c0_i32 : i32, i32
  }
  func.func @transform_2(%arg0: i32) -> (i32, i32) {
    %c0_i32 = arith.constant 0 : i32
    %c0_i32_0 = arith.constant 0 : i32
    return %arg0, %c0_i32 : i32, i32
  }
}

</mosaic_0001>

<bundles_post_ra>
// kernel: tpu_custom_call.1
= control target key start
LH: loop header
LB: loop body
LE: loop exit
PB: predicated region body
PF: predicated region fallthrough
CT: control target
= control target key end

     0   :  { %7 = vsyncpa [#allocation3], 0  ;;  %s1148_s0 = inlined_call_operand.hbm [shape: f32[512,256], index: 0, kind: input, shape index: {}]   ;;  %s1149_s1 = inlined_call_operand.hbm [shape: f32[512,128], index: 1, kind: input, shape index: {}]   ;;  %s1150_s2 = inlined_call_operand.hbm [shape: f32[512,384], index: 2, kind: output, shape index: {}]  }
   0x1   :  { %9 = vsyncpa [#allocation3 + $0x1], 0 }
   0x2   :  { %10 = vsyncpa [#allocation6], 0 }
   0x3   :  { %12 = vsyncpa [#allocation6 + $0x1], 0 }
   0x4   :  { %13 = vsyncpa [#allocation4], 0 }
   0x5   :  { %15 = vsyncpa [#allocation4 + $0x1], 0  ;;  %s739_s9 = smov 0   ;;  %s741_s10 = smov 0  }
   0x6   :  { %s743_s11 = smov 0   ;;  %s745_s12 = smov 0  }
   0x7 LB: > { %s760_s13 = sadd.s32 4294967295, %s713_s12   ;;  %s509_s14 = sadd.s32 4294967294, %s713_s12   ;;  %s713_s12 = sphi %s745_s12, %s1166_s12   ;;  %s709_s11 = sphi %s743_s11, %s1165_s11   ;;  %s705_s10 = sphi %s741_s10, %s1164_s10   ;;  %s701_s9 = sphi %s739_s9, %s1163_s9  }
   0x8   : > { %s764_s15 = sadd.s32 1, %s713_s12   ;;  %s28_s16 = sadd.s32 1, %s709_s11 }
   0x9   : > { %s25_s17 = ssub.s32 %s713_s12, %s764_s15  ;;  %p35_p0 = scmp.ne.s32.totalorder %s709_s11, %s705_s10 }
   0xa   : > { %p26_p1 = scmp.eq.s32.totalorder %s25_s17, 0  ;;  %p36_p2 = scmp.eq.s32.totalorder %s713_s12, 0 }
   0xb   : > { %p41_p3 = scmp.ne.s32.totalorder %s705_s10, %s701_s9  ;;  %p42_p4 = scmp.eq.s32.totalorder %s760_s13, 0 }
   0xc   : > { %s776_s18 = scalar_select %p26_p1, %s709_s11, %s28_s16  }
   0xd   : > { %p778_p5 = por %p36_p2, %p35_p0  ;;  %p782_p6 = por %p42_p4, %p41_p3 }
   0xe   : > { %p91_p7 = scmp.eq.s32.totalorder %s760_s13, 1  ;;  %p97_p8 = scmp.eq.s32.totalorder %s509_s14, 1 }
   0xf   : > { %s1154_s20 = scalar_select %p782_p6, 1, 0 }
  0x10   : > { %p549_p10 = scmp.lt.s32.totalorder %s713_s12, 2  ;;  %p789_p11 = por %p91_p7, %p35_p0 }
  0x11   : > { %p793_p12 = por %p97_p8, %p41_p3  ;;  %s798_s23 = sand.u32 1, %s709_s11  }
  0x12   : > { %s1155_s21 = scalar_select %p789_p11, 1, 0 }
  0x13   : > { %s1156_s22 = scalar_select %p793_p12, 1, 0 }
  0x14   : > { %s528_s24 = sshll.u32 %s713_s12, 13  ;;  %s512_s25 = sshll.u32 %s798_s23, 9 }
  0x15   : > { %s805_s28 = scalar_lea.hbm %s1148_s0, %s528_s24  ;;  %s121_s29 = scalar_lea.vmem [#allocation2], %s512_s25 }
  0x16   : > { %s129_s30 = sshll.u32 %s121_s29, 4  ;;  %p809_p13 = pnand %p549_p10, %p778_p5  ;;  %s813_s30 = int_to_ptr.vmem [resolvable:$true] %s129_s30 }
  0x17   : > { %s118_s4 = scalar_lea.sflag [#allocation3], %s798_s23  ;;  %s589_s5 = scalar_lea.hbm %s805_s28, 8192 }
  0x18   : > { %p590_p0 = scmp.ne.s32.totalorder %s805_s28, %s589_s5  ;;  %p591_p1 = pneg %p809_p13 }
  0x19   : > { %s594_s8 = scalar_lea.hbm %s1148_s0, 16384  ;;  %p595_p4 = scmp.lt.s32.totalorder %s805_s28, %s1148_s0 }
  0x1a   : > { %p592_p2 = pnand %p591_p1, %p590_p0  ;;  %p596_p5 = scmp.lt.s32.totalorder %s594_s8, %s589_s5 }
  0x1c   : > { %p593_p3 = pneg %p592_p2  ;;  %p597_p7 = por %p596_p5, %p595_p4 }
  0x1e   : > { %p598_p8 = pnand %p597_p7, %p593_p3 }
  0x20   : > { %601 = shalt.err (!%p598_p8)
}
  0x21   : > { %s602_s17 = scalar_lea.vmem %s813_s30, 8192  ;;  %s715_s19 = smov [#allocation2]  }
  0x22   : > { %p603_p10 = scmp.ne.s32.totalorder %s813_s30, %s602_s17  ;;  %s607_s24 = sshll.u32 %s715_s19, 4  ;;  %s608_s24 = int_to_ptr.vmem [resolvable:$false] %s607_s24 }
  0x23   : > { %s609_s25 = scalar_lea.vmem %s608_s24, 16384  ;;  %p610_p9 = scmp.lt.s32.totalorder %s813_s30, %s608_s24 }
  0x24   : > { %p605_p0 = pnand %p603_p10, %p591_p1  ;;  %p611_p12 = scmp.lt.s32.totalorder %s609_s25, %s602_s17 }
  0x26   : > { %p606_p2 = pneg %p605_p0  ;;  %p612_p11 = por %p611_p12, %p610_p9 }
  0x28   : > { %p613_p4 = pnand %p612_p11, %p606_p2 }
  0x2a   : > { %616 = shalt.err (!%p613_p4)
}
  0x2b   : > { %s716_s26 = smov 256   ;;  %s717_s27 = smov 16  }
  0x2c   : > { %541 = dma.hbm_to_vmem [thread:$0]  (!%p809_p13), %s805_s28, 8192, %s813_s30, %s118_s4, %s716_s26, %s716_s26, %s717_s27  }
  0x2d   : > { %p519_p3 = scmp.ge.s32.totalorder %s713_s12, 1  ;;  %p158_p5 = scmp.lt.s32.totalorder %s713_s12, 3 }
  0x2e   : > { %s516_s29 = sshll.u32 %s798_s23, 8  ;;  %s529_s6 = sshll.u32 %s713_s12, 12 }
  0x2f   : > { %p845_p9 = pnand %p519_p3, %p158_p5  ;;  %s143_s7 = scalar_lea.vmem [#allocation5], %s516_s29 }
  0x30   : > { %s150_s8 = sshll.u32 %s143_s7, 4  ;;  %s853_s17 = scalar_lea.hbm %s1149_s1, %s529_s6  ;;  %s855_s8 = int_to_ptr.vmem [resolvable:$true] %s150_s8 }
  0x31   : > { %s140_s28 = scalar_lea.sflag [#allocation6], %s798_s23  ;;  %s617_s30 = scalar_lea.hbm %s853_s17, 4096 }
  0x32   : > { %p618_p11 = scmp.ne.s32.totalorder %s853_s17, %s617_s30  ;;  %s622_s24 = scalar_lea.hbm %s1149_s1, 8192 }
  0x33   : > { %p623_p8 = scmp.lt.s32.totalorder %s853_s17, %s1149_s1  ;;  %p624_p10 = scmp.lt.s32.totalorder %s622_s24, %s617_s30 }
  0x34   : > { %p620_p12 = pnand %p618_p11, %p591_p1 }
  0x35   : > { %p625_p0 = por %p624_p10, %p623_p8 }
  0x36   : > { %p621_p7 = pneg %p620_p12 }
  0x38   : > { %p626_p2 = pnand %p625_p0, %p621_p7 }
  0x3a   : > { %629 = shalt.err (!%p626_p2)
}
  0x3b   : > { %s630_s27 = scalar_lea.vmem %s855_s8, 4096  ;;  %s718_s29 = smov [#allocation5]  }
  0x3c   : > { %p631_p4 = scmp.ne.s32.totalorder %s855_s8, %s630_s27  ;;  %s635_s6 = sshll.u32 %s718_s29, 4  ;;  %s636_s6 = int_to_ptr.vmem [resolvable:$false] %s635_s6 }
  0x3d   : > { %s637_s7 = scalar_lea.vmem %s636_s6, 8192  ;;  %p638_p11 = scmp.lt.s32.totalorder %s855_s8, %s636_s6 }
  0x3e   : > { %p633_p3 = pnand %p631_p4, %p591_p1  ;;  %p639_p12 = scmp.lt.s32.totalorder %s637_s7, %s630_s27 }
  0x40   : > { %p634_p5 = pneg %p633_p3  ;;  %p640_p6 = por %p639_p12, %p638_p11 }
  0x42   : > { %p641_p8 = pnand %p640_p6, %p634_p5 }
  0x44   : > { %644 = shalt.err (!%p641_p8)
}
  0x45   : > { %s719_s14 = smov 128   ;;  %s720_s16 = smov 8  }
  0x46   : > { %544 = dma.hbm_to_vmem [thread:$0]  (!%p809_p13), %s853_s17, 4096, %s855_s8, %s140_s28, %s719_s14, %s719_s14, %s720_s16  }
  0x47   : > { %162 = sbr.rel (%p845_p9) target bundleno = 144 (0x90), region = 28  ;;  %s885_s30 = sand.u32 (!%p845_p9), 1, %s705_s10  }
  0x48   : > { %s520_s4 = sshll.u32 (!%p845_p9), %s885_s30, 9  ;;  %s165_s19 = scalar_lea.sflag (!%p845_p9), [#allocation3], %s885_s30 }
  0x49   : > { %s889_s24 = scalar_lea.vmem (!%p845_p9), [#allocation2], %s520_s4  ;;  %p1159_p6 = scmp.ne.s32.totalorder (!%p845_p9), %s1154_s20, 0 }
  0x4c   : > { %688 = dma.done.wait (%p1159_p6), %s165_s19, 8192  }
  0x4d   : > { %690 = vsyncadd (%p1159_p6), %s165_s19, 4294959104  ;;  %s521_s23 = sshll.u32 %s885_s30, 8  ;;  %s174_s3 = scalar_lea.sflag [#allocation6], %s885_s30 }
  0x4e   : > { %s897_s5 = scalar_lea.vmem [#allocation5], %s521_s23 }
  0x4f   : > { %692 = dma.done.wait (%p1159_p6), %s174_s3, 4096  }
  0x50   : > { %694 = vsyncadd (%p1159_p6), %s174_s3, 4294963200  ;;  %s530_s8 = smul.u32 768, %s885_s30  ;;  %v206_v0 = vld [vmem:[%s889_s24] sm:$0xff]  ;;  %v207_v1 = vld [vmem:[%s889_s24 + $0x8] sm:$0xff]  ;;  %s399_s27 = scalar_lea.sflag [#allocation4], %s885_s30 }
  0x51   : > { %v208_v2 = vld [vmem:[%s889_s24 + $0x10] sm:$0xff]  ;;  %v209_v3 = vld [vmem:[%s889_s24 + $0x18] sm:$0xff]  ;;  %v210_v4 = vld [vmem:[%s889_s24 + $0x20] sm:$0xff]  ;;  %s531_s20 = smul.u32 12288, %s760_s13  ;;  %p1160_p1 = scmp.ne.s32.totalorder %s1155_s21, 0 }
  0x52   : > { %s907_s17 = scalar_lea.vmem [#allocation7], %s530_s8  ;;  %v211_v5 = vld [vmem:[%s889_s24 + $0x28] sm:$0xff]  ;;  %v212_v6 = vld [vmem:[%s889_s24 + $0x30] sm:$0xff]  ;;  %v213_v7 = vld [vmem:[%s889_s24 + $0x38] sm:$0xff]  ;;  %s721_s6 = smov [#allocation7]  }
  0x53   : > { %270 = vst [vmem:[%s907_s17] sm:$0xff] %v206_v0  ;;  %271 = vst [vmem:[%s907_s17 + $0x8] sm:$0xff] %v207_v1  ;;  %v214_v8 = vld [vmem:[%s889_s24 + $0x40] sm:$0xff]  ;;  %v215_v9 = vld [vmem:[%s889_s24 + $0x48] sm:$0xff]  ;;  %s413_s28 = sshll.u32 %s907_s17, 4  ;;  %s1094_s26 = scalar_lea.hbm %s1150_s2, %s531_s20  ;;  %s1096_s28 = int_to_ptr.vmem [resolvable:$true] %s413_s28 }
  0x54   : > { %272 = vst [vmem:[%s907_s17 + $0x18] sm:$0xff] %v208_v2  ;;  %273 = vst [vmem:[%s907_s17 + $0x20] sm:$0xff] %v209_v3  ;;  %v216_v10 = vld [vmem:[%s889_s24 + $0x50] sm:$0xff]  ;;  %v217_v11 = vld [vmem:[%s889_s24 + $0x58] sm:$0xff]  ;;  %s645_s29 = scalar_lea.vmem %s1096_s28, 12288  ;;  %s649_s7 = sshll.u32 %s721_s6, 4  ;;  %s650_s7 = int_to_ptr.vmem [resolvable:$false] %s649_s7 }
  0x55   : > { %274 = vst [vmem:[%s907_s17 + $0x30] sm:$0xff] %v210_v4  ;;  %275 = vst [vmem:[%s907_s17 + $0x38] sm:$0xff] %v211_v5  ;;  %v218_v12 = vld [vmem:[%s889_s24 + $0x60] sm:$0xff]  ;;  %v219_v13 = vld [vmem:[%s889_s24 + $0x68] sm:$0xff]  ;;  %p646_p13 = scmp.ne.s32.totalorder %s1096_s28, %s645_s29  ;;  %s651_s14 = scalar_lea.vmem %s650_s7, 24576 }
  0x56   : > { %276 = vst [vmem:[%s907_s17 + $0x48] sm:$0xff] %v212_v6  ;;  %277 = vst [vmem:[%s907_s17 + $0x50] sm:$0xff] %v213_v7  ;;  %v220_v14 = vld [vmem:[%s889_s24 + $0x70] sm:$0xff]  ;;  %v221_v15 = vld [vmem:[%s889_s24 + $0x78] sm:$0xff]  ;;  %p652_p10 = scmp.lt.s32.totalorder %s1096_s28, %s650_s7  ;;  %p653_p0 = scmp.lt.s32.totalorder %s651_s14, %s645_s29 }
  0x57   : > { %278 = vst [vmem:[%s907_s17 + $0x60] sm:$0xff] %v214_v8  ;;  %279 = vst [vmem:[%s907_s17 + $0x68] sm:$0xff] %v215_v9  ;;  %v222_v16 = vld [vmem:[%s889_s24 + $0x80] sm:$0xff]  ;;  %v223_v17 = vld [vmem:[%s889_s24 + $0x88] sm:$0xff]  ;;  %p647_p9 = pnand %p646_p13, %p1160_p1 }
  0x58   : > { %280 = vst [vmem:[%s907_s17 + $0x78] sm:$0xff] %v216_v10  ;;  %281 = vst [vmem:[%s907_s17 + $0x80] sm:$0xff] %v217_v11  ;;  %v224_v18 = vld [vmem:[%s889_s24 + $0x90] sm:$0xff]  ;;  %v225_v19 = vld [vmem:[%s889_s24 + $0x98] sm:$0xff]  ;;  %p654_p2 = por %p653_p0, %p652_p10 }
  0x59   : > { %282 = vst [vmem:[%s907_s17 + $0x90] sm:$0xff] %v218_v12  ;;  %283 = vst [vmem:[%s907_s17 + $0x98] sm:$0xff] %v219_v13  ;;  %v226_v20 = vld [vmem:[%s889_s24 + $0xa0] sm:$0xff]  ;;  %v227_v21 = vld [vmem:[%s889_s24 + $0xa8] sm:$0xff]  ;;  %p648_p7 = pneg %p647_p9 }
  0x5a   : > { %284 = vst [vmem:[%s907_s17 + $0xa8] sm:$0xff] %v220_v14  ;;  %285 = vst [vmem:[%s907_s17 + $0xb0] sm:$0xff] %v221_v15  ;;  %v228_v22 = vld [vmem:[%s889_s24 + $0xb0] sm:$0xff]  ;;  %v229_v23 = vld [vmem:[%s889_s24 + $0xb8] sm:$0xff] }
  0x5b   : > { %286 = vst [vmem:[%s907_s17 + $0xc0] sm:$0xff] %v222_v16  ;;  %287 = vst [vmem:[%s907_s17 + $0xc8] sm:$0xff] %v223_v17  ;;  %v230_v24 = vld [vmem:[%s889_s24 + $0xc0] sm:$0xff]  ;;  %v231_v25 = vld [vmem:[%s889_s24 + $0xc8] sm:$0xff]  ;;  %p655_p4 = pnand %p654_p2, %p648_p7 }
  0x5c   : > { %288 = vst [vmem:[%s907_s17 + $0xd8] sm:$0xff] %v224_v18  ;;  %289 = vst [vmem:[%s907_s17 + $0xe0] sm:$0xff] %v225_v19  ;;  %v232_v26 = vld [vmem:[%s889_s24 + $0xd0] sm:$0xff]  ;;  %v233_v27 = vld [vmem:[%s889_s24 + $0xd8] sm:$0xff] }
  0x5d   : > { %290 = vst [vmem:[%s907_s17 + $0xf0] sm:$0xff] %v226_v20  ;;  %291 = vst [vmem:[%s907_s17 + $0xf8] sm:$0xff] %v227_v21  ;;  %v234_v28 = vld [vmem:[%s889_s24 + $0xe0] sm:$0xff]  ;;  %v235_v29 = vld [vmem:[%s889_s24 + $0xe8] sm:$0xff] }
  0x5e   : > { %292 = vst [vmem:[%s907_s17 + $0x108] sm:$0xff] %v228_v22  ;;  %293 = vst [vmem:[%s907_s17 + $0x110] sm:$0xff] %v229_v23  ;;  %v236_v30 = vld [vmem:[%s889_s24 + $0xf0] sm:$0xff]  ;;  %v237_v31 = vld [vmem:[%s889_s24 + $0xf8] sm:$0xff] }
  0x5f   : > { %294 = vst [vmem:[%s907_s17 + $0x120] sm:$0xff] %v230_v24  ;;  %295 = vst [vmem:[%s907_s17 + $0x128] sm:$0xff] %v231_v25  ;;  %v238_v32 = vld [vmem:[%s889_s24 + $0x100] sm:$0xff]  ;;  %v239_v33 = vld [vmem:[%s889_s24 + $0x108] sm:$0xff] }
  0x60   : > { %296 = vst [vmem:[%s907_s17 + $0x138] sm:$0xff] %v232_v26  ;;  %297 = vst [vmem:[%s907_s17 + $0x140] sm:$0xff] %v233_v27  ;;  %v240_v34 = vld [vmem:[%s889_s24 + $0x110] sm:$0xff]  ;;  %v241_v35 = vld [vmem:[%s889_s24 + $0x118] sm:$0xff] }
  0x61   : > { %298 = vst [vmem:[%s907_s17 + $0x150] sm:$0xff] %v234_v28  ;;  %299 = vst [vmem:[%s907_s17 + $0x158] sm:$0xff] %v235_v29  ;;  %v242_v36 = vld [vmem:[%s889_s24 + $0x120] sm:$0xff]  ;;  %v243_v37 = vld [vmem:[%s889_s24 + $0x128] sm:$0xff] }
  0x62   : > { %300 = vst [vmem:[%s907_s17 + $0x168] sm:$0xff] %v236_v30  ;;  %301 = vst [vmem:[%s907_s17 + $0x170] sm:$0xff] %v237_v31  ;;  %v244_v38 = vld [vmem:[%s889_s24 + $0x130] sm:$0xff]  ;;  %v245_v39 = vld [vmem:[%s889_s24 + $0x138] sm:$0xff] }
  0x63   : > { %302 = vst [vmem:[%s907_s17 + $0x180] sm:$0xff] %v238_v32  ;;  %303 = vst [vmem:[%s907_s17 + $0x188] sm:$0xff] %v239_v33  ;;  %v246_v40 = vld [vmem:[%s889_s24 + $0x140] sm:$0xff]  ;;  %v247_v41 = vld [vmem:[%s889_s24 + $0x148] sm:$0xff] }
  0x64   : > { %304 = vst [vmem:[%s907_s17 + $0x198] sm:$0xff] %v240_v34  ;;  %305 = vst [vmem:[%s907_s17 + $0x1a0] sm:$0xff] %v241_v35  ;;  %v248_v42 = vld [vmem:[%s889_s24 + $0x150] sm:$0xff]  ;;  %v249_v43 = vld [vmem:[%s889_s24 + $0x158] sm:$0xff] }
  0x65   : > { %306 = vst [vmem:[%s907_s17 + $0x1b0] sm:$0xff] %v242_v36  ;;  %307 = vst [vmem:[%s907_s17 + $0x1b8] sm:$0xff] %v243_v37  ;;  %v250_v44 = vld [vmem:[%s889_s24 + $0x160] sm:$0xff]  ;;  %v251_v45 = vld [vmem:[%s889_s24 + $0x168] sm:$0xff] }
  0x66   : > { %308 = vst [vmem:[%s907_s17 + $0x1c8] sm:$0xff] %v244_v38  ;;  %309 = vst [vmem:[%s907_s17 + $0x1d0] sm:$0xff] %v245_v39  ;;  %v252_v46 = vld [vmem:[%s889_s24 + $0x170] sm:$0xff]  ;;  %v253_v47 = vld [vmem:[%s889_s24 + $0x178] sm:$0xff] }
  0x67   : > { %310 = vst [vmem:[%s907_s17 + $0x1e0] sm:$0xff] %v246_v40  ;;  %311 = vst [vmem:[%s907_s17 + $0x1e8] sm:$0xff] %v247_v41  ;;  %v254_v48 = vld [vmem:[%s889_s24 + $0x180] sm:$0xff]  ;;  %v255_v49 = vld [vmem:[%s889_s24 + $0x188] sm:$0xff] }
  0x68   : > { %312 = vst [vmem:[%s907_s17 + $0x1f8] sm:$0xff] %v248_v42  ;;  %313 = vst [vmem:[%s907_s17 + $0x200] sm:$0xff] %v249_v43  ;;  %v256_v50 = vld [vmem:[%s889_s24 + $0x190] sm:$0xff]  ;;  %v257_v51 = vld [vmem:[%s889_s24 + $0x198] sm:$0xff] }
  0x69   : > { %314 = vst [vmem:[%s907_s17 + $0x210] sm:$0xff] %v250_v44  ;;  %315 = vst [vmem:[%s907_s17 + $0x218] sm:$0xff] %v251_v45  ;;  %v258_v52 = vld [vmem:[%s889_s24 + $0x1a0] sm:$0xff]  ;;  %v259_v53 = vld [vmem:[%s889_s24 + $0x1a8] sm:$0xff] }
  0x6a   : > { %316 = vst [vmem:[%s907_s17 + $0x228] sm:$0xff] %v252_v46  ;;  %317 = vst [vmem:[%s907_s17 + $0x230] sm:$0xff] %v253_v47  ;;  %v260_v54 = vld [vmem:[%s889_s24 + $0x1b0] sm:$0xff]  ;;  %v261_v55 = vld [vmem:[%s889_s24 + $0x1b8] sm:$0xff] }
  0x6b   : > { %318 = vst [vmem:[%s907_s17 + $0x240] sm:$0xff] %v254_v48  ;;  %319 = vst [vmem:[%s907_s17 + $0x248] sm:$0xff] %v255_v49  ;;  %v262_v56 = vld [vmem:[%s889_s24 + $0x1c0] sm:$0xff]  ;;  %v263_v57 = vld [vmem:[%s889_s24 + $0x1c8] sm:$0xff] }
  0x6c   : > { %320 = vst [vmem:[%s907_s17 + $0x258] sm:$0xff] %v256_v50  ;;  %321 = vst [vmem:[%s907_s17 + $0x260] sm:$0xff] %v257_v51  ;;  %v264_v58 = vld [vmem:[%s889_s24 + $0x1d0] sm:$0xff]  ;;  %v265_v59 = vld [vmem:[%s889_s24 + $0x1d8] sm:$0xff] }
  0x6d   : > { %322 = vst [vmem:[%s907_s17 + $0x270] sm:$0xff] %v258_v52  ;;  %323 = vst [vmem:[%s907_s17 + $0x278] sm:$0xff] %v259_v53  ;;  %v266_v60 = vld [vmem:[%s889_s24 + $0x1e0] sm:$0xff]  ;;  %v267_v61 = vld [vmem:[%s889_s24 + $0x1e8] sm:$0xff] }
  0x6e   : > { %324 = vst [vmem:[%s907_s17 + $0x288] sm:$0xff] %v260_v54  ;;  %325 = vst [vmem:[%s907_s17 + $0x290] sm:$0xff] %v261_v55  ;;  %v268_v62 = vld [vmem:[%s889_s24 + $0x1f0] sm:$0xff]  ;;  %v269_v63 = vld [vmem:[%s889_s24 + $0x1f8] sm:$0xff] }
  0x6f   : > { %326 = vst [vmem:[%s907_s17 + $0x2a0] sm:$0xff] %v262_v56  ;;  %327 = vst [vmem:[%s907_s17 + $0x2a8] sm:$0xff] %v263_v57  ;;  %v334_v0 = vld [vmem:[%s897_s5] sm:$0xff]  ;;  %v335_v1 = vld [vmem:[%s897_s5 + $0x8] sm:$0xff] }
  0x70   : > { %328 = vst [vmem:[%s907_s17 + $0x2b8] sm:$0xff] %v264_v58  ;;  %329 = vst [vmem:[%s907_s17 + $0x2c0] sm:$0xff] %v265_v59  ;;  %v336_v2 = vld [vmem:[%s897_s5 + $0x10] sm:$0xff]  ;;  %v337_v3 = vld [vmem:[%s897_s5 + $0x18] sm:$0xff] }
  0x71   : > { %330 = vst [vmem:[%s907_s17 + $0x2d0] sm:$0xff] %v266_v60  ;;  %331 = vst [vmem:[%s907_s17 + $0x2d8] sm:$0xff] %v267_v61  ;;  %v338_v4 = vld [vmem:[%s897_s5 + $0x20] sm:$0xff]  ;;  %v339_v5 = vld [vmem:[%s897_s5 + $0x28] sm:$0xff] }
  0x72   : > { %332 = vst [vmem:[%s907_s17 + $0x2e8] sm:$0xff] %v268_v62  ;;  %333 = vst [vmem:[%s907_s17 + $0x2f0] sm:$0xff] %v269_v63  ;;  %v340_v6 = vld [vmem:[%s897_s5 + $0x30] sm:$0xff]  ;;  %v341_v7 = vld [vmem:[%s897_s5 + $0x38] sm:$0xff] }
  0x73   : > { %366 = vst [vmem:[%s907_s17 + $0x10] sm:$0xff] %v334_v0  ;;  %367 = vst [vmem:[%s907_s17 + $0x28] sm:$0xff] %v335_v1  ;;  %v342_v8 = vld [vmem:[%s897_s5 + $0x40] sm:$0xff]  ;;  %v343_v9 = vld [vmem:[%s897_s5 + $0x48] sm:$0xff] }
  0x74   : > { %368 = vst [vmem:[%s907_s17 + $0x40] sm:$0xff] %v336_v2  ;;  %369 = vst [vmem:[%s907_s17 + $0x58] sm:$0xff] %v337_v3  ;;  %v344_v10 = vld [vmem:[%s897_s5 + $0x50] sm:$0xff]  ;;  %v345_v11 = vld [vmem:[%s897_s5 + $0x58] sm:$0xff] }
  0x75   : > { %370 = vst [vmem:[%s907_s17 + $0x70] sm:$0xff] %v338_v4  ;;  %371 = vst [vmem:[%s907_s17 + $0x88] sm:$0xff] %v339_v5  ;;  %v346_v12 = vld [vmem:[%s897_s5 + $0x60] sm:$0xff]  ;;  %v347_v13 = vld [vmem:[%s897_s5 + $0x68] sm:$0xff] }
  0x76   : > { %372 = vst [vmem:[%s907_s17 + $0xa0] sm:$0xff] %v340_v6  ;;  %373 = vst [vmem:[%s907_s17 + $0xb8] sm:$0xff] %v341_v7  ;;  %v348_v14 = vld [vmem:[%s897_s5 + $0x70] sm:$0xff]  ;;  %v349_v15 = vld [vmem:[%s897_s5 + $0x78] sm:$0xff] }
  0x77   : > { %374 = vst [vmem:[%s907_s17 + $0xd0] sm:$0xff] %v342_v8  ;;  %375 = vst [vmem:[%s907_s17 + $0xe8] sm:$0xff] %v343_v9  ;;  %v350_v16 = vld [vmem:[%s897_s5 + $0x80] sm:$0xff]  ;;  %v351_v17 = vld [vmem:[%s897_s5 + $0x88] sm:$0xff] }
  0x78   : > { %376 = vst [vmem:[%s907_s17 + $0x100] sm:$0xff] %v344_v10  ;;  %377 = vst [vmem:[%s907_s17 + $0x118] sm:$0xff] %v345_v11  ;;  %v352_v18 = vld [vmem:[%s897_s5 + $0x90] sm:$0xff]  ;;  %v353_v19 = vld [vmem:[%s897_s5 + $0x98] sm:$0xff] }
  0x79   : > { %378 = vst [vmem:[%s907_s17 + $0x130] sm:$0xff] %v346_v12  ;;  %379 = vst [vmem:[%s907_s17 + $0x148] sm:$0xff] %v347_v13  ;;  %v354_v20 = vld [vmem:[%s897_s5 + $0xa0] sm:$0xff]  ;;  %v355_v21 = vld [vmem:[%s897_s5 + $0xa8] sm:$0xff] }
  0x7a   : > { %380 = vst [vmem:[%s907_s17 + $0x160] sm:$0xff] %v348_v14  ;;  %381 = vst [vmem:[%s907_s17 + $0x178] sm:$0xff] %v349_v15  ;;  %v356_v22 = vld [vmem:[%s897_s5 + $0xb0] sm:$0xff]  ;;  %v357_v23 = vld [vmem:[%s897_s5 + $0xb8] sm:$0xff] }
  0x7b   : > { %382 = vst [vmem:[%s907_s17 + $0x190] sm:$0xff] %v350_v16  ;;  %383 = vst [vmem:[%s907_s17 + $0x1a8] sm:$0xff] %v351_v17  ;;  %v358_v24 = vld [vmem:[%s897_s5 + $0xc0] sm:$0xff]  ;;  %v359_v25 = vld [vmem:[%s897_s5 + $0xc8] sm:$0xff] }
  0x7c   : > { %384 = vst [vmem:[%s907_s17 + $0x1c0] sm:$0xff] %v352_v18  ;;  %385 = vst [vmem:[%s907_s17 + $0x1d8] sm:$0xff] %v353_v19  ;;  %v360_v26 = vld [vmem:[%s897_s5 + $0xd0] sm:$0xff]  ;;  %v361_v27 = vld [vmem:[%s897_s5 + $0xd8] sm:$0xff] }
  0x7d   : > { %386 = vst [vmem:[%s907_s17 + $0x1f0] sm:$0xff] %v354_v20  ;;  %387 = vst [vmem:[%s907_s17 + $0x208] sm:$0xff] %v355_v21  ;;  %v362_v28 = vld [vmem:[%s897_s5 + $0xe0] sm:$0xff]  ;;  %v363_v29 = vld [vmem:[%s897_s5 + $0xe8] sm:$0xff] }
  0x7e   : > { %388 = vst [vmem:[%s907_s17 + $0x220] sm:$0xff] %v356_v22  ;;  %389 = vst [vmem:[%s907_s17 + $0x238] sm:$0xff] %v357_v23  ;;  %v364_v30 = vld [vmem:[%s897_s5 + $0xf0] sm:$0xff]  ;;  %v365_v31 = vld [vmem:[%s897_s5 + $0xf8] sm:$0xff] }
  0x7f   : > { %390 = vst [vmem:[%s907_s17 + $0x250] sm:$0xff] %v358_v24  ;;  %391 = vst [vmem:[%s907_s17 + $0x268] sm:$0xff] %v359_v25 }
  0x80   : > { %392 = vst [vmem:[%s907_s17 + $0x280] sm:$0xff] %v360_v26  ;;  %393 = vst [vmem:[%s907_s17 + $0x298] sm:$0xff] %v361_v27 }
  0x81   : > { %394 = vst [vmem:[%s907_s17 + $0x2b0] sm:$0xff] %v362_v28  ;;  %395 = vst [vmem:[%s907_s17 + $0x2c8] sm:$0xff] %v363_v29 }
  0x82   : > { %396 = vst [vmem:[%s907_s17 + $0x2e0] sm:$0xff] %v364_v30  ;;  %397 = vst [vmem:[%s907_s17 + $0x2f8] sm:$0xff] %v365_v31 }
  0x83   : > { %658 = shalt.err (!%p655_p4)
}
  0x84   : > { %s659_s16 = scalar_lea.hbm %s1094_s26, 12288  ;;  %s663_s24 = scalar_lea.hbm %s1150_s2, 24576 }
  0x85   : > { %p660_p3 = scmp.ne.s32.totalorder %s1094_s26, %s659_s16  ;;  %p664_p12 = scmp.lt.s32.totalorder %s1094_s26, %s1150_s2 }
  0x86   : > { %p665_p8 = scmp.lt.s32.totalorder %s663_s24, %s659_s16 }
  0x87   : > { %p661_p5 = pnand %p660_p3, %p1160_p1 }
  0x88   : > { %p666_p6 = por %p665_p8, %p664_p12 }
  0x89   : > { %p662_p11 = pneg %p661_p5 }
  0x8b   : > { %p667_p13 = pnand %p666_p6, %p662_p11 }
  0x8d   : > { %670 = shalt.err (!%p667_p13)
}
  0x8e   : > { %s722_s5 = smov 384   ;;  %s723_s8 = smov 24  }
  0x8f   : > { %536 = dma.vmem_to_hbm [thread:$0]  (%p1160_p1), %s1096_s28, 12288, %s1094_s26, %s399_s27, %s722_s5, %s722_s5, %s723_s8  }
  0x90 PF: > { %s428_s17 = sand.u32 1, %s701_s9   ;;  %p1161_p9 = scmp.ne.s32.totalorder %s1156_s22, 0 }
  0x91   : > { %p1162_p7 = scmp.ge.s32.totalorder %s713_s12, 2  ;;  %s429_s20 = scalar_lea.sflag [#allocation4], %s428_s17 }
  0x93   : > { %p546_p10 = pnand %p1162_p7, %p1161_p9 }
  0x95   : > { %p547_p0 = pneg %p546_p10 }
  0x97   : > { %696 = dma.done.wait (%p547_p0), %s429_s20, 12288  }
  0x98   : > { %698 = vsyncadd (%p547_p0), %s429_s20, 4294955008  ;;  %p18_p2 = scmp.ge.s32.totalorder %s764_s15, 4   ;;  %s1163_s9 = smov %s705_s10 }
  0x99   : > { %s1164_s10 = smov %s709_s11  ;;  %s1165_s11 = smov %s776_s18 }
  0x9a   : > { %s1166_s12 = smov %s764_s15  ;;  %20 = sbr.rel (!%p18_p2) target bundleno = 7 (0x7), region = 86 }
  0x9f   :  { %434 = vsyncpa [#allocation3], 1 }
  0xa0   :  { %436 = vsyncpa [#allocation3 + $0x1], 1 }
  0xa1   :  { %437 = vsyncpa [#allocation6], 1 }
  0xa2   :  { %439 = vsyncpa [#allocation6 + $0x1], 1 }
  0xa3   :  { %440 = vsyncpa [#allocation4], 1 }
  0xa4   :  { %442 = vsyncpa [#allocation4 + $0x1], 1 }

</bundles_post_ra>
